<compile_context>
chip_gen: v7x
topology: tpu7x:2x2x1
jax: 0.10.0
libtpu: 0.0.40
codegen_flags: <defaults>
</compile_context>

<pallas_src>
import functools

import numpy as np

import jax
import jax.numpy as jnp
from jax.experimental import pallas as pl
from jax.experimental.pallas import tpu as pltpu

EPS = 1e-5  # nn.InstanceNorm2d default eps (affine=False, no running stats)


# ---------------------------------------------------------------------------
# Pallas kernel: NB images of one BasicBlock forward per grid step.
# ---------------------------------------------------------------------------
def _basic_block_kernel(x_ref, w1_ref, b1_ref, w2_ref, b2_ref, o_ref, *, NB, H, W, C):
    """x_ref/o_ref: (NB, H, W*C) lane-dense activations.
    w*_ref: (3*W*C, W*C) banded conv weights (W-reflection folded in), one
            (W*C, W*C) block per kh row tap.
    b*_ref: (1, W*C) lane-tiled bias."""
    WC = W * C
    inv_n = 1.0 / float(H * W)
    pow2_w = (W & (W - 1)) == 0  # static

    def channel_fold(s):
        # s: (rows, WC) per-lane sums -> per-channel sums broadcast to every lane of
        # that channel.  Lane layout is w-major / c-minor, so summing lanes that are
        # congruent mod C is a log2(W) roll-reduce on the XLU (off the MXU path).
        if pow2_w:
            shift = C
            while shift < WC:
                s = s + pltpu.roll(s, shift, 1)
                shift *= 2
            return s
        # Fallback for non power-of-two W: in-kernel pooling matmul (no HBM constant).
        li = jax.lax.broadcasted_iota(jnp.int32, (WC, WC), 0) % C
        lj = jax.lax.broadcasted_iota(jnp.int32, (WC, WC), 1) % C
        pool = (li == lj).astype(jnp.float32)
        return jnp.dot(s, pool, preferred_element_type=jnp.float32)

    def conv3x3(src, w_ref, b_ref):
        # src: (NB, H, WC).  Row reflection only (ReflectionPad2d(1) in H); the W
        # reflection lives inside the banded weights.  One accumulate matmul per kh.
        x0 = jnp.concatenate([src[:, 1:2], src[:, :H - 1]], axis=1)      # row h-1
        x2 = jnp.concatenate([src[:, 1:], src[:, H - 2:H - 1]], axis=1)  # row h+1
        y = jnp.dot(x0.reshape(NB * H, WC), w_ref[0:WC, :],
                    preferred_element_type=jnp.float32)
        y = y + jnp.dot(src.reshape(NB * H, WC), w_ref[WC:2 * WC, :],
                        preferred_element_type=jnp.float32)
        y = y + jnp.dot(x2.reshape(NB * H, WC), w_ref[2 * WC:3 * WC, :],
                        preferred_element_type=jnp.float32)
        return (y + b_ref[...]).reshape(NB, H, WC)

    def instance_norm(y):
        # One-pass per-image stats while y is hot: per-lane sums over H, then the
        # per-channel fold/broadcast over W via the roll tree.
        s = jnp.concatenate([jnp.sum(y, axis=1), jnp.sum(y * y, axis=1)], axis=0)
        m = channel_fold(s) * inv_n                      # (2*NB, WC)
        mean = m[:NB]                                    # per-channel mean, per lane
        var = m[NB:] - mean * mean                       # E[x^2] - E[x]^2 (f32 only)
        inv_std = jax.lax.rsqrt(var + EPS)               # EUP
        return (y - mean[:, None, :]) * inv_std[:, None, :]

    x = x_ref[...].astype(jnp.float32)                   # (NB, H, WC)
    y = jnp.maximum(instance_norm(conv3x3(x, w1_ref, b1_ref)), 0.0)
    y = instance_norm(conv3x3(y, w2_ref, b2_ref))
    # residual add + relu (re-read x_ref so x isn't kept live across both convs)
    o_ref[...] = jnp.maximum(y + x_ref[...].astype(jnp.float32), 0.0).astype(o_ref.dtype)


# ---------------------------------------------------------------------------
# Parameter preprocessing (hoisted: run once per weight set, not per forward).
# ---------------------------------------------------------------------------
def _band_weights(w_hwio, W):
    """HWIO (3,3,C,C) -> (3*W*C, W*C) banded weight with the W-direction
    ReflectionPad2d(1) folded in, so rows-layout(x) @ B == conv output per kh tap."""
    C = w_hwio.shape[2]
    wout = np.arange(W)
    # T[kw, win, wout] = 1 iff input column `win` feeds output column `wout` through
    # horizontal tap kw (after reflection of the pad columns).
    T = np.zeros((3, W, W), dtype=np.float32)
    for kw in range(3):
        win = wout - 1 + kw
        win = np.where(win < 0, -win, win)
        win = np.where(win >= W, 2 * (W - 1) - win, win)
        T[kw, win, wout] = 1.0
    B = jnp.einsum("kvw,hkio->hviwo", jnp.asarray(T), w_hwio.astype(jnp.float32))
    return B.reshape(3 * W * C, W * C)


def init_basic_block_params(w1, b1, w2, b2, W):
    """Precompute banded weights + lane-tiled biases (call once, reuse per forward)."""
    C = w1.shape[2]
    WC = W * C
    return (_band_weights(w1, W),
            jnp.tile(b1.astype(jnp.float32), W).reshape(1, WC),
            _band_weights(w2, W),
            jnp.tile(b2.astype(jnp.float32), W).reshape(1, WC))


def _pick_block_batch(N, target=8):
    """Images per grid step: fill the MXU M dim (NB*H) while keeping >= 2 grid steps
    so the 'parallel' batch axis still feeds both v7x TensorCores."""
    if N < 2:
        return 1
    best = 1
    for d in range(1, min(target, N // 2) + 1):
        if N % d == 0:
            best = d
    return best


# ---------------------------------------------------------------------------
# Lane-dense layout helpers (transpose only at the network boundary).
# ---------------------------------------------------------------------------
def nchw_to_lane(x_nchw):
    N, C, H, W = x_nchw.shape
    return jnp.transpose(x_nchw, (0, 2, 3, 1)).reshape(N, H, W * C)


def lane_to_nchw(x_lane, C):
    N, H, WC = x_lane.shape
    W = WC // C
    return jnp.transpose(x_lane.reshape(N, H, W, C), (0, 3, 1, 2))


# ---------------------------------------------------------------------------
# Pallas entry point on the lane-dense layout.
# ---------------------------------------------------------------------------
def basic_block_apply(x_lane, B1, b1l, B2, b2l, *, W, C):
    """x_lane: (N, H, W*C) float32.  B*, b*l from init_basic_block_params."""
    N, H, WC = x_lane.shape
    assert WC == W * C and H >= 3 and W >= 3, (x_lane.shape, W, C)
    NB = _pick_block_batch(N)

    kernel = functools.partial(_basic_block_kernel, NB=NB, H=H, W=W, C=C)

    return pl.pallas_call(
        kernel,
        out_shape=jax.ShapeDtypeStruct((N, H, WC), x_lane.dtype),
        grid_spec=pltpu.PrefetchScalarGridSpec(
            num_scalar_prefetch=0,
            grid=(N // NB,),
            in_specs=[
                pl.BlockSpec((NB, H, WC), lambda n: (n, 0, 0)),      # x (lane-dense)
                pl.BlockSpec(B1.shape, lambda n: (0, 0)),            # banded w1
                pl.BlockSpec((1, WC), lambda n: (0, 0)),             # b1 (lane-tiled)
                pl.BlockSpec(B2.shape, lambda n: (0, 0)),            # banded w2
                pl.BlockSpec((1, WC), lambda n: (0, 0)),             # b2 (lane-tiled)
            ],
            out_specs=pl.BlockSpec((NB, H, WC), lambda n: (n, 0, 0)),
            # no scratch_shapes: padding is value-level, stats fold uses rolls
        ),
        compiler_params=pltpu.CompilerParams(
            dimension_semantics=("parallel",)),
    )(x_lane, B1, b1l, B2, b2l)


def basic_block_orj(x_nchw, w1, b1, w2, b2):
    """Convenience one-shot wrapper: NCHW in / NCHW out."""
    N, C, H, W = x_nchw.shape
    params = init_basic_block_params(w1, b1, w2, b2, W)
    y = basic_block_apply(nchw_to_lane(x_nchw), *params, W=W, C=C)
    return lane_to_nchw(y, C)


# ---------------------------------------------------------------------------
# Pure-JAX reference (for correctness check).
# ---------------------------------------------------------------------------
def _reference(x_nchw, w1, b1, w2, b2):
    x = jnp.transpose(x_nchw, (0, 2, 3, 1))

    def rpad(a):
        return jnp.pad(a, ((0, 0), (1, 1), (1, 1), (0, 0)), mode="reflect")

    def conv(a, w, b):
        y = jax.lax.conv_general_dilated(
            a, w, window_strides=(1, 1), padding="VALID",
            dimension_numbers=("NHWC", "HWIO", "NHWC"))
        return y + b

    def inorm(a):
        m = a.mean(axis=(1, 2), keepdims=True)
        v = ((a - m) ** 2).mean(axis=(1, 2), keepdims=True)
        return (a - m) * jax.lax.rsqrt(v + EPS)

    y = jax.nn.relu(inorm(conv(rpad(x), w1, b1)))
    y = inorm(conv(rpad(y), w2, b2))
    y = jax.nn.relu(y + x)
    return jnp.transpose(y, (0, 3, 1, 2))


if __name__ == "__main__":
    # Small shapes consistent with the module: inplanes == planes (residual add).
    # N=4 exercises the batched (NB=2) grid path; W*C = 128 keeps lanes dense.
    N, C, H, W = 4, 8, 16, 16

    key = jax.random.PRNGKey(0)
    kx, kw1, kb1, kw2, kb2 = jax.random.split(key, 5)

    x = jax.random.normal(kx, (N, C, H, W), dtype=jnp.float32)
    # Deterministic synthetic parameters (HWIO layout for kernel and reference).
    w1 = 0.1 * jax.random.normal(kw1, (3, 3, C, C), dtype=jnp.float32)
    b1 = 0.1 * jax.random.normal(kb1, (C,), dtype=jnp.float32)
    w2 = 0.1 * jax.random.normal(kw2, (3, 3, C, C), dtype=jnp.float32)
    b2 = 0.1 * jax.random.normal(kb2, (C,), dtype=jnp.float32)

    # Hoisted-params path (the recommended way to chain blocks).
    params = init_basic_block_params(w1, b1, w2, b2, W)
    out_lane = jax.block_until_ready(
        basic_block_apply(nchw_to_lane(x), *params, W=W, C=C))
    out = lane_to_nchw(out_lane, C)

    ref = jax.block_until_ready(_reference(x, w1, b1, w2, b2))

    assert out.shape == (N, C, H, W), out.shape
    assert jnp.allclose(out, ref, atol=1e-4, rtol=1e-4), float(
        jnp.max(jnp.abs(out - ref)))
    print("KERNEL_OK")
</pallas_src>

<mosaic_0001>
module attributes {stable_mosaic.version = 11 : i64} {
  func.func @_basic_block_kernel(%arg0: i32, %arg1: memref<2x16x128xf32, #tpu.memory_space<vmem>>, %arg2: memref<384x128xf32, #tpu.memory_space<vmem>>, %arg3: memref<1x128xf32, #tpu.memory_space<vmem>>, %arg4: memref<384x128xf32, #tpu.memory_space<vmem>>, %arg5: memref<1x128xf32, #tpu.memory_space<vmem>>, %arg6: memref<2x16x128xf32, #tpu.memory_space<vmem>>) attributes {dimension_semantics = [#tpu.dimension_semantics<parallel>], iteration_bounds = array<i64: 2>, scalar_prefetch = 0 : i64, scratch_operands = 0 : i64, tpu.core_type = #tpu.core_type<tc>, window_params = [{transform_indices = @transform_0, window_bounds = array<i64: 2, 16, 128>}, {pipeline_mode = #tpu.pipeline_mode<synchronous>, transform_indices = @transform_1, window_bounds = array<i64: 384, 128>}, {pipeline_mode = #tpu.pipeline_mode<synchronous>, transform_indices = @transform_2, window_bounds = array<i64: 1, 128>}, {pipeline_mode = #tpu.pipeline_mode<synchronous>, transform_indices = @transform_3, window_bounds = array<i64: 384, 128>}, {pipeline_mode = #tpu.pipeline_mode<synchronous>, transform_indices = @transform_4, window_bounds = array<i64: 1, 128>}, {transform_indices = @transform_5, window_bounds = array<i64: 2, 16, 128>}]} {
    %c0 = arith.constant 0 : index
    %c0_0 = arith.constant 0 : index
    %c0_1 = arith.constant 0 : index
    %0 = vector.load %arg1[%c0, %c0_0, %c0_1] : memref<2x16x128xf32, #tpu.memory_space<vmem>>, vector<2x16x128xf32>
    %1 = vector.extract_strided_slice %0 {offsets = [0, 1, 0], sizes = [2, 1, 128], strides = [1, 1, 1]} : vector<2x16x128xf32> to vector<2x1x128xf32>
    %2 = vector.extract_strided_slice %0 {offsets = [0, 0, 0], sizes = [2, 15, 128], strides = [1, 1, 1]} : vector<2x16x128xf32> to vector<2x15x128xf32>
    %3 = tpu.concatenate %1, %2 in 1 : vector<2x1x128xf32>, vector<2x15x128xf32> -> vector<2x16x128xf32>
    %4 = vector.extract_strided_slice %0 {offsets = [0, 1, 0], sizes = [2, 15, 128], strides = [1, 1, 1]} : vector<2x16x128xf32> to vector<2x15x128xf32>
    %5 = vector.extract_strided_slice %0 {offsets = [0, 14, 0], sizes = [2, 1, 128], strides = [1, 1, 1]} : vector<2x16x128xf32> to vector<2x1x128xf32>
    %6 = tpu.concatenate %4, %5 in 1 : vector<2x15x128xf32>, vector<2x1x128xf32> -> vector<2x16x128xf32>
    %7 = vector.shape_cast %3 : vector<2x16x128xf32> to vector<32x128xf32>
    %c0_2 = arith.constant 0 : index
    %c0_3 = arith.constant 0 : index
    %8 = vector.load %arg2[%c0_2, %c0_3] : memref<384x128xf32, #tpu.memory_space<vmem>>, vector<128x128xf32>
    %cst = arith.constant dense<0.000000e+00> : vector<32x128xf32>
    %9 = tpu.matmul %7, %8, %cst {dimension_numbers = #tpu.dot_dimension_numbers<[1], [0], [0], [1], [0, 0, 1, 1], [], []>} : vector<32x128xf32>, vector<128x128xf32>, vector<32x128xf32> -> vector<32x128xf32>
    %10 = vector.shape_cast %0 : vector<2x16x128xf32> to vector<32x128xf32>
    %c128 = arith.constant 128 : index
    %c0_4 = arith.constant 0 : index
    %11 = vector.load %arg2[%c128, %c0_4] : memref<384x128xf32, #tpu.memory_space<vmem>>, vector<128x128xf32>
    %cst_5 = arith.constant dense<0.000000e+00> : vector<32x128xf32>
    %12 = tpu.matmul %10, %11, %cst_5 {dimension_numbers = #tpu.dot_dimension_numbers<[1], [0], [0], [1], [0, 0, 1, 1], [], []>} : vector<32x128xf32>, vector<128x128xf32>, vector<32x128xf32> -> vector<32x128xf32>
    %13 = arith.addf %9, %12 : vector<32x128xf32>
    %14 = vector.shape_cast %6 : vector<2x16x128xf32> to vector<32x128xf32>
    %c256 = arith.constant 256 : index
    %c0_6 = arith.constant 0 : index
    %15 = vector.load %arg2[%c256, %c0_6] : memref<384x128xf32, #tpu.memory_space<vmem>>, vector<128x128xf32>
    %cst_7 = arith.constant dense<0.000000e+00> : vector<32x128xf32>
    %16 = tpu.matmul %14, %15, %cst_7 {dimension_numbers = #tpu.dot_dimension_numbers<[1], [0], [0], [1], [0, 0, 1, 1], [], []>} : vector<32x128xf32>, vector<128x128xf32>, vector<32x128xf32> -> vector<32x128xf32>
    %17 = arith.addf %13, %16 : vector<32x128xf32>
    %c0_8 = arith.constant 0 : index
    %c0_9 = arith.constant 0 : index
    %18 = vector.load %arg3[%c0_8, %c0_9] : memref<1x128xf32, #tpu.memory_space<vmem>>, vector<1x128xf32>
    %19 = vector.broadcast %18 : vector<1x128xf32> to vector<32x128xf32>
    %20 = arith.addf %17, %19 : vector<32x128xf32>
    %21 = vector.shape_cast %20 : vector<32x128xf32> to vector<2x16x128xf32>
    %cst_10 = arith.constant dense<0.000000e+00> : vector<2x128xf32>
    %22 = vector.multi_reduction <add>, %21, %cst_10 [1] : vector<2x16x128xf32> to vector<2x128xf32>
    %23 = arith.mulf %21, %21 : vector<2x16x128xf32>
    %cst_11 = arith.constant dense<0.000000e+00> : vector<2x128xf32>
    %24 = vector.multi_reduction <add>, %23, %cst_11 [1] : vector<2x16x128xf32> to vector<2x128xf32>
    %25 = tpu.concatenate %22, %24 in 0 : vector<2x128xf32>, vector<2x128xf32> -> vector<4x128xf32>
    %c8_i32 = arith.constant 8 : i32
    %26 = tpu.dynamic_rotate %25 by %c8_i32 dim 1 : vector<4x128xf32>, i32 -> vector<4x128xf32>
    %27 = arith.addf %25, %26 : vector<4x128xf32>
    %c16_i32 = arith.constant 16 : i32
    %28 = tpu.dynamic_rotate %27 by %c16_i32 dim 1 : vector<4x128xf32>, i32 -> vector<4x128xf32>
    %29 = arith.addf %27, %28 : vector<4x128xf32>
    %c32_i32 = arith.constant 32 : i32
    %30 = tpu.dynamic_rotate %29 by %c32_i32 dim 1 : vector<4x128xf32>, i32 -> vector<4x128xf32>
    %31 = arith.addf %29, %30 : vector<4x128xf32>
    %c64_i32 = arith.constant 64 : i32
    %32 = tpu.dynamic_rotate %31 by %c64_i32 dim 1 : vector<4x128xf32>, i32 -> vector<4x128xf32>
    %33 = arith.addf %31, %32 : vector<4x128xf32>
    %cst_12 = arith.constant 3.906250e-03 : f32
    %34 = vector.broadcast %cst_12 : f32 to vector<4x128xf32>
    %35 = arith.mulf %33, %34 : vector<4x128xf32>
    %36 = vector.extract_strided_slice %35 {offsets = [0, 0], sizes = [2, 128], strides = [1, 1]} : vector<4x128xf32> to vector<2x128xf32>
    %37 = vector.extract_strided_slice %35 {offsets = [2, 0], sizes = [2, 128], strides = [1, 1]} : vector<4x128xf32> to vector<2x128xf32>
    %38 = arith.mulf %36, %36 : vector<2x128xf32>
    %39 = arith.subf %37, %38 : vector<2x128xf32>
    %cst_13 = arith.constant 9.99999974E-6 : f32
    %40 = vector.broadcast %cst_13 : f32 to vector<2x128xf32>
    %41 = arith.addf %39, %40 : vector<2x128xf32>
    %42 = math.rsqrt %41 : vector<2x128xf32>
    %43 = vector.shape_cast %36 : vector<2x128xf32> to vector<2x1x128xf32>
    %44 = vector.broadcast %43 : vector<2x1x128xf32> to vector<2x16x128xf32>
    %45 = arith.subf %21, %44 : vector<2x16x128xf32>
    %46 = vector.shape_cast %42 : vector<2x128xf32> to vector<2x1x128xf32>
    %47 = vector.broadcast %46 : vector<2x1x128xf32> to vector<2x16x128xf32>
    %48 = arith.mulf %45, %47 : vector<2x16x128xf32>
    %cst_14 = arith.constant 0.000000e+00 : f32
    %49 = vector.broadcast %cst_14 : f32 to vector<2x16x128xf32>
    %50 = arith.maximumf %48, %49 : vector<2x16x128xf32>
    %51 = vector.extract_strided_slice %50 {offsets = [0, 1, 0], sizes = [2, 1, 128], strides = [1, 1, 1]} : vector<2x16x128xf32> to vector<2x1x128xf32>
    %52 = vector.extract_strided_slice %50 {offsets = [0, 0, 0], sizes = [2, 15, 128], strides = [1, 1, 1]} : vector<2x16x128xf32> to vector<2x15x128xf32>
    %53 = tpu.concatenate %51, %52 in 1 : vector<2x1x128xf32>, vector<2x15x128xf32> -> vector<2x16x128xf32>
    %54 = vector.extract_strided_slice %50 {offsets = [0, 1, 0], sizes = [2, 15, 128], strides = [1, 1, 1]} : vector<2x16x128xf32> to vector<2x15x128xf32>
    %55 = vector.extract_strided_slice %50 {offsets = [0, 14, 0], sizes = [2, 1, 128], strides = [1, 1, 1]} : vector<2x16x128xf32> to vector<2x1x128xf32>
    %56 = tpu.concatenate %54, %55 in 1 : vector<2x15x128xf32>, vector<2x1x128xf32> -> vector<2x16x128xf32>
    %57 = vector.shape_cast %53 : vector<2x16x128xf32> to vector<32x128xf32>
    %c0_15 = arith.constant 0 : index
    %c0_16 = arith.constant 0 : index
    %58 = vector.load %arg4[%c0_15, %c0_16] : memref<384x128xf32, #tpu.memory_space<vmem>>, vector<128x128xf32>
    %cst_17 = arith.constant dense<0.000000e+00> : vector<32x128xf32>
    %59 = tpu.matmul %57, %58, %cst_17 {dimension_numbers = #tpu.dot_dimension_numbers<[1], [0], [0], [1], [0, 0, 1, 1], [], []>} : vector<32x128xf32>, vector<128x128xf32>, vector<32x128xf32> -> vector<32x128xf32>
    %60 = vector.shape_cast %50 : vector<2x16x128xf32> to vector<32x128xf32>
    %c128_18 = arith.constant 128 : index
    %c0_19 = arith.constant 0 : index
    %61 = vector.load %arg4[%c128_18, %c0_19] : memref<384x128xf32, #tpu.memory_space<vmem>>, vector<128x128xf32>
    %cst_20 = arith.constant dense<0.000000e+00> : vector<32x128xf32>
    %62 = tpu.matmul %60, %61, %cst_20 {dimension_numbers = #tpu.dot_dimension_numbers<[1], [0], [0], [1], [0, 0, 1, 1], [], []>} : vector<32x128xf32>, vector<128x128xf32>, vector<32x128xf32> -> vector<32x128xf32>
    %63 = arith.addf %59, %62 : vector<32x128xf32>
    %64 = vector.shape_cast %56 : vector<2x16x128xf32> to vector<32x128xf32>
    %c256_21 = arith.constant 256 : index
    %c0_22 = arith.constant 0 : index
    %65 = vector.load %arg4[%c256_21, %c0_22] : memref<384x128xf32, #tpu.memory_space<vmem>>, vector<128x128xf32>
    %cst_23 = arith.constant dense<0.000000e+00> : vector<32x128xf32>
    %66 = tpu.matmul %64, %65, %cst_23 {dimension_numbers = #tpu.dot_dimension_numbers<[1], [0], [0], [1], [0, 0, 1, 1], [], []>} : vector<32x128xf32>, vector<128x128xf32>, vector<32x128xf32> -> vector<32x128xf32>
    %67 = arith.addf %63, %66 : vector<32x128xf32>
    %c0_24 = arith.constant 0 : index
    %c0_25 = arith.constant 0 : index
    %68 = vector.load %arg5[%c0_24, %c0_25] : memref<1x128xf32, #tpu.memory_space<vmem>>, vector<1x128xf32>
    %69 = vector.broadcast %68 : vector<1x128xf32> to vector<32x128xf32>
    %70 = arith.addf %67, %69 : vector<32x128xf32>
    %71 = vector.shape_cast %70 : vector<32x128xf32> to vector<2x16x128xf32>
    %cst_26 = arith.constant dense<0.000000e+00> : vector<2x128xf32>
    %72 = vector.multi_reduction <add>, %71, %cst_26 [1] : vector<2x16x128xf32> to vector<2x128xf32>
    %73 = arith.mulf %71, %71 : vector<2x16x128xf32>
    %cst_27 = arith.constant dense<0.000000e+00> : vector<2x128xf32>
    %74 = vector.multi_reduction <add>, %73, %cst_27 [1] : vector<2x16x128xf32> to vector<2x128xf32>
    %75 = tpu.concatenate %72, %74 in 0 : vector<2x128xf32>, vector<2x128xf32> -> vector<4x128xf32>
    %c8_i32_28 = arith.constant 8 : i32
    %76 = tpu.dynamic_rotate %75 by %c8_i32_28 dim 1 : vector<4x128xf32>, i32 -> vector<4x128xf32>
    %77 = arith.addf %75, %76 : vector<4x128xf32>
    %c16_i32_29 = arith.constant 16 : i32
    %78 = tpu.dynamic_rotate %77 by %c16_i32_29 dim 1 : vector<4x128xf32>, i32 -> vector<4x128xf32>
    %79 = arith.addf %77, %78 : vector<4x128xf32>
    %c32_i32_30 = arith.constant 32 : i32
    %80 = tpu.dynamic_rotate %79 by %c32_i32_30 dim 1 : vector<4x128xf32>, i32 -> vector<4x128xf32>
    %81 = arith.addf %79, %80 : vector<4x128xf32>
    %c64_i32_31 = arith.constant 64 : i32
    %82 = tpu.dynamic_rotate %81 by %c64_i32_31 dim 1 : vector<4x128xf32>, i32 -> vector<4x128xf32>
    %83 = arith.addf %81, %82 : vector<4x128xf32>
    %cst_32 = arith.constant 3.906250e-03 : f32
    %84 = vector.broadcast %cst_32 : f32 to vector<4x128xf32>
    %85 = arith.mulf %83, %84 : vector<4x128xf32>
    %86 = vector.extract_strided_slice %85 {offsets = [0, 0], sizes = [2, 128], strides = [1, 1]} : vector<4x128xf32> to vector<2x128xf32>
    %87 = vector.extract_strided_slice %85 {offsets = [2, 0], sizes = [2, 128], strides = [1, 1]} : vector<4x128xf32> to vector<2x128xf32>
    %88 = arith.mulf %86, %86 : vector<2x128xf32>
    %89 = arith.subf %87, %88 : vector<2x128xf32>
    %cst_33 = arith.constant 9.99999974E-6 : f32
    %90 = vector.broadcast %cst_33 : f32 to vector<2x128xf32>
    %91 = arith.addf %89, %90 : vector<2x128xf32>
    %92 = math.rsqrt %91 : vector<2x128xf32>
    %93 = vector.shape_cast %86 : vector<2x128xf32> to vector<2x1x128xf32>
    %94 = vector.broadcast %93 : vector<2x1x128xf32> to vector<2x16x128xf32>
    %95 = arith.subf %71, %94 : vector<2x16x128xf32>
    %96 = vector.shape_cast %92 : vector<2x128xf32> to vector<2x1x128xf32>
    %97 = vector.broadcast %96 : vector<2x1x128xf32> to vector<2x16x128xf32>
    %98 = arith.mulf %95, %97 : vector<2x16x128xf32>
    %c0_34 = arith.constant 0 : index
    %c0_35 = arith.constant 0 : index
    %c0_36 = arith.constant 0 : index
    %99 = vector.load %arg1[%c0_34, %c0_35, %c0_36] : memref<2x16x128xf32, #tpu.memory_space<vmem>>, vector<2x16x128xf32>
    %100 = arith.addf %98, %99 : vector<2x16x128xf32>
    %cst_37 = arith.constant 0.000000e+00 : f32
    %101 = vector.broadcast %cst_37 : f32 to vector<2x16x128xf32>
    %102 = arith.maximumf %100, %101 : vector<2x16x128xf32>
    %c0_38 = arith.constant 0 : index
    %c0_39 = arith.constant 0 : index
    %c0_40 = arith.constant 0 : index
    %103 = vector.load %arg6[%c0_38, %c0_39, %c0_40] : memref<2x16x128xf32, #tpu.memory_space<vmem>>, vector<2x16x128xf32>
    tpu.vector_store %arg6[%c0_38, %c0_39, %c0_40], %102 {strides = array<i32>} : memref<2x16x128xf32, #tpu.memory_space<vmem>>, vector<2x16x128xf32>,
    return
  }
  func.func @transform_0(%arg0: i32) -> (i32, i32, i32) {
    %c0_i32 = arith.constant 0 : i32
    %c0_i32_0 = arith.constant 0 : i32
    %c0_i32_1 = arith.constant 0 : i32
    return %arg0, %c0_i32, %c0_i32_0 : i32, i32, i32
  }
  func.func @transform_1(%arg0: i32) -> (i32, i32) {
    %c0_i32 = arith.constant 0 : i32
    %c0_i32_0 = arith.constant 0 : i32
    %c0_i32_1 = arith.constant 0 : i32
    return %c0_i32, %c0_i32_0 : i32, i32
  }
  func.func @transform_2(%arg0: i32) -> (i32, i32) {
    %c0_i32 = arith.constant 0 : i32
    %c0_i32_0 = arith.constant 0 : i32
    %c0_i32_1 = arith.constant 0 : i32
    return %c0_i32, %c0_i32_0 : i32, i32
  }
  func.func @transform_3(%arg0: i32) -> (i32, i32) {
    %c0_i32 = arith.constant 0 : i32
    %c0_i32_0 = arith.constant 0 : i32
    %c0_i32_1 = arith.constant 0 : i32
    return %c0_i32, %c0_i32_0 : i32, i32
  }
  func.func @transform_4(%arg0: i32) -> (i32, i32) {
    %c0_i32 = arith.constant 0 : i32
    %c0_i32_0 = arith.constant 0 : i32
    %c0_i32_1 = arith.constant 0 : i32
    return %c0_i32, %c0_i32_0 : i32, i32
  }
  func.func @transform_5(%arg0: i32) -> (i32, i32, i32) {
    %c0_i32 = arith.constant 0 : i32
    %c0_i32_0 = arith.constant 0 : i32
    %c0_i32_1 = arith.constant 0 : i32
    return %arg0, %c0_i32, %c0_i32_0 : i32, i32, i32
  }
}

</mosaic_0001>

<bundles_post_ra>
// kernel: tpu_custom_call.1
= control target key start
LH: loop header
LB: loop body
LE: loop exit
PB: predicated region body
PF: predicated region fallthrough
CT: control target
= control target key end

     0   :  { %10 = vsyncpa [#allocation3], 0  ;;  %s2656_s0 = inlined_call_operand.hbm [shape: f32[4,16,128], index: 0, kind: input, shape index: {}]   ;;  %s2657_s1 = inlined_call_operand.hbm [shape: f32[384,128], index: 1, kind: input, shape index: {}]   ;;  %s2658_s2 = inlined_call_operand.vmem [shape: f32[1,128], index: 2, kind: input, shape index: {}]   ;;  %s2659_s3 = inlined_call_operand.hbm [shape: f32[384,128], index: 3, kind: input, shape index: {}]   ;;  %s2660_s4 = inlined_call_operand.vmem [shape: f32[1,128], index: 4, kind: input, shape index: {}]   ;;  %s2661_s5 = inlined_call_operand.hbm [shape: f32[4,16,128], index: 5, kind: output, shape index: {}]  }
   0x1   :  { %12 = vsyncpa [#allocation3 + $0x1], 0 }
   0x2   :  { %13 = vsyncpa [#allocation6], 0 }
   0x3   :  { %14 = vsyncpa [#allocation4], 0 }
   0x4   :  { %16 = vsyncpa [#allocation4 + $0x1], 0  ;;  %s2242_s18 = smov 0   ;;  %s2244_s19 = smov 0  }
   0x5   :  { %s2246_s20 = smov 0   ;;  %s2248_s21 = smov 0  }
   0x6 LB: > { %s2263_s22 = sadd.s32 4294967295, %s2198_s21   ;;  %s1381_s23 = sadd.s32 4294967294, %s2198_s21   ;;  %s2198_s21 = sphi %s2248_s21, %s2681_s21   ;;  %s2194_s20 = sphi %s2246_s20, %s2680_s20   ;;  %s2190_s19 = sphi %s2244_s19, %s2679_s19   ;;  %s2186_s18 = sphi %s2242_s18, %s2678_s18  }
   0x7   : > { %p42_p0 = scmp.ne.s32.totalorder %s2190_s19, %s2186_s18  ;;  %p2662_p1 = scmp.eq.s32.totalorder %s2263_s22, 0 }
   0x8   : > { %p156_p3 = scmp.eq.s32.totalorder %s1381_s23, 1  ;;  %p1382_p5 = scmp.ge.s32.totalorder %s2198_s21, 1 }
   0x9   : > { %p2272_p4 = por %p2662_p1, %p42_p0  ;;  %p163_p7 = scmp.lt.s32.totalorder %s2198_s21, 3 }
   0xa   : > { %p2277_p6 = por %p156_p3, %p42_p0  ;;  %s2200_s27 = smov [#allocation5]  }
   0xb   : > { %s2665_s24 = scalar_select %p2272_p4, 1, 0 }
   0xc   : > { %s2666_s25 = scalar_select %p2277_p6, 1, 0 }
   0xd   : > { %p2282_p8 = pnand %p1382_p5, %p163_p7  ;;  %s175_s28 = sshll.u32 %s2200_s27, 4  ;;  %s2286_s28 = int_to_ptr.vmem [resolvable:$true] %s175_s28 }
   0xe   : > { %s2201_s30 = smov [#allocation7]   ;;  %s2042_s9 = scalar_lea.hbm %s2657_s1, 6144 }
   0xf   : > { %p1975_p9 = pneg %p2282_p8  ;;  %s191_s6 = sshll.u32 %s2201_s30, 4  ;;  %s2297_s6 = int_to_ptr.vmem [resolvable:$true] %s191_s6 }
  0x10   : > { %p2043_p12 = scmp.ne.s32.totalorder %s2657_s1, %s2042_s9  ;;  %p2049_p5 = scmp.lt.u32.totalorder %s2042_s9, %s2657_s1 }
  0x11   : > { %p2293_p11 = pnand %p1975_p9, %p2662_p1 }
  0x13   : > { %p2044_p13 = pneg %p2293_p11 }
  0x15   : > { %p2045_p0 = pnand %p2044_p13, %p2043_p12 }
  0x17   : > { %p2046_p3 = pneg %p2045_p0 }
  0x19   : > { %p2051_p7 = pnand %p2049_p5, %p2046_p3 }
  0x1b   : > { %2054 = shalt.err (!%p2051_p7)
}
  0x1c   : > { %s2055_s14 = scalar_lea.vmem %s2286_s28, 6144  ;;  %p2063_p2 = scmp.lt.s32.totalorder %s2286_s28, %s2286_s28 }
  0x1d   : > { %p2056_p9 = scmp.ne.s32.totalorder %s2286_s28, %s2055_s14  ;;  %p2064_p12 = scmp.lt.s32.totalorder %s2055_s14, %s2055_s14 }
  0x1f   : > { %p2058_p10 = pnand %p2056_p9, %p2044_p13  ;;  %p2065_p0 = por %p2064_p12, %p2063_p2 }
  0x21   : > { %p2059_p1 = pneg %p2058_p10 }
  0x23   : > { %p2066_p6 = pnand %p2065_p0, %p2059_p1 }
  0x25   : > { %2069 = shalt.err (!%p2066_p6)
}
  0x26   : > { %s2202_s15 = smov 128   ;;  %s2203_s16 = smov 8  }
  0x27   : > { %1978 = dma.hbm_to_vmem [thread:$0]  (!%p2293_p11), %s2657_s1, 6144, %s2286_s28, [#allocation6], %s2202_s15, %s2202_s15, %s2203_s16  }
  0x28   : > { %s2070_s7 = scalar_lea.hbm %s2659_s3, 6144 }
  0x29   : > { %p2071_p1 = scmp.ne.s32.totalorder %s2659_s3, %s2070_s7  ;;  %p2077_p10 = scmp.lt.u32.totalorder %s2070_s7, %s2659_s3 }
  0x2b   : > { %p2073_p2 = pnand %p2071_p1, %p2044_p13 }
  0x2d   : > { %p2074_p6 = pneg %p2073_p2 }
  0x2f   : > { %p2079_p3 = pnand %p2077_p10, %p2074_p6 }
  0x31   : > { %2082 = shalt.err (!%p2079_p3)
}
  0x32   : > { %s2083_s28 = scalar_lea.vmem %s2297_s6, 6144  ;;  %p2091_p12 = scmp.lt.s32.totalorder %s2297_s6, %s2297_s6 }
  0x33   : > { %p2084_p5 = scmp.ne.s32.totalorder %s2297_s6, %s2083_s28  ;;  %p2092_p0 = scmp.lt.s32.totalorder %s2083_s28, %s2083_s28 }
  0x35   : > { %p2086_p7 = pnand %p2084_p5, %p2044_p13  ;;  %p2093_p1 = por %p2092_p0, %p2091_p12 }
  0x37   : > { %p2087_p9 = pneg %p2086_p7 }
  0x39   : > { %p2094_p2 = pnand %p2093_p1, %p2087_p9 }
  0x3b   : > { %2097 = shalt.err (!%p2094_p2)
}
  0x3c   : > { %1981 = dma.hbm_to_vmem [thread:$0]  (!%p2293_p11), %s2659_s3, 6144, %s2297_s6, [#allocation6], %s2202_s15, %s2202_s15, %s2203_s16  }
  0x3d   : > { %s2358_s29 = sadd.s32 1, %s2198_s21   ;;  %s29_s14 = sadd.s32 1, %s2194_s20 }
  0x3e   : > { %s26_s17 = ssub.s32 %s2198_s21, %s2358_s29  ;;  %p36_p13 = scmp.ne.s32.totalorder %s2194_s20, %s2190_s19 }
  0x3f   : > { %p27_p6 = scmp.eq.s32.totalorder %s26_s17, 0  ;;  %p37_p10 = scmp.eq.s32.totalorder %s2198_s21, 0 }
  0x40   : > { %p2669_p3 = scmp.eq.s32.totalorder %s2263_s22, 1  ;;  %p1992_p7 = scmp.lt.s32.totalorder %s2198_s21, 2 }
  0x41   : > { %s2374_s27 = scalar_select %p27_p6, %s2194_s20, %s29_s14  }
  0x42   : > { %p2368_p5 = por %p2669_p3, %p36_p13  ;;  %p38_p9 = por %p37_p10, %p36_p13 }
  0x43   : > { %s208_s30 = sand.u32 1, %s2194_s20   ;;  %s1404_s6 = sshll.u32 %s2198_s21, 9 }
  0x44   : > { %s2670_s23 = scalar_select %p2368_p5, 1, 0 }
  0x45   : > { %s1386_s7 = sshll.u32 %s208_s30, 5  ;;  %s2381_s10 = scalar_lea.hbm %s2656_s0, %s1404_s6 }
  0x46   : > { %s212_s11 = scalar_lea.vmem [#allocation2], %s1386_s7  ;;  %p2385_p11 = pnand %p1992_p7, %p38_p9 }
  0x47   : > { %s220_s28 = sshll.u32 %s212_s11, 4  ;;  %s2389_s13 = scalar_lea.sflag [#allocation3], %s208_s30  ;;  %s2383_s28 = int_to_ptr.vmem [resolvable:$true] %s220_s28 }
  0x48   : > { %s2098_s14 = scalar_lea.hbm %s2381_s10, 512  ;;  %p2100_p0 = pneg %p2385_p11 }
  0x49   : > { %p2099_p12 = scmp.ne.s32.totalorder %s2381_s10, %s2098_s14  ;;  %s2103_s6 = scalar_lea.hbm %s2656_s0, 1024 }
  0x4a   : > { %p2104_p13 = scmp.lt.u32.totalorder %s2381_s10, %s2656_s0  ;;  %p2105_p6 = scmp.lt.u32.totalorder %s2103_s6, %s2098_s14 }
  0x4b   : > { %p2101_p1 = pnand %p2100_p0, %p2099_p12  ;;  %p2107_p3 = scmp.lt.u32.totalorder %s2098_s14, %s2381_s10 }
  0x4c   : > { %p2106_p10 = por %p2105_p6, %p2104_p13 }
  0x4d   : > { %p2102_p2 = pneg %p2101_p1 }
  0x4e   : > { %p2108_p7 = por %p2107_p3, %p2106_p10 }
  0x50   : > { %p2109_p9 = pnand %p2108_p7, %p2102_p2 }
  0x52   : > { %2112 = shalt.err (!%p2109_p9)
}
  0x53   : > { %s2113_s30 = scalar_lea.vmem %s2383_s28, 512  ;;  %s2204_s11 = smov [#allocation2]  }
  0x54   : > { %p2114_p12 = scmp.ne.s32.totalorder %s2383_s28, %s2113_s30  ;;  %s2118_s17 = sshll.u32 %s2204_s11, 4  ;;  %s2119_s17 = int_to_ptr.vmem [resolvable:$false] %s2118_s17 }
  0x55   : > { %s2120_s7 = scalar_lea.vmem %s2119_s17, 1024  ;;  %p2121_p4 = scmp.lt.s32.totalorder %s2383_s28, %s2119_s17 }
  0x56   : > { %p2116_p1 = pnand %p2114_p12, %p2100_p0  ;;  %p2122_p13 = scmp.lt.s32.totalorder %s2120_s7, %s2113_s30 }
  0x58   : > { %p2117_p5 = pneg %p2116_p1  ;;  %p2123_p6 = por %p2122_p13, %p2121_p4 }
  0x5a   : > { %p2124_p10 = pnand %p2123_p6, %p2117_p5 }
  0x5c   : > { %2127 = shalt.err (!%p2124_p10)
}
  0x5d   : > { %1985 = dma.hbm_to_vmem [thread:$0]  (!%p2385_p11), %s2381_s10, 512, %s2383_s28, %s2389_s13, %s2202_s15, %s2202_s15, %s2203_s16  }
  0x5e   : > { %232 = sbr.rel (%p2282_p8) target bundleno = 1764 (0x6e4), region = 40  ;;  %s2423_s14 = sand.u32 (!%p2282_p8), 1, %s2190_s19  }
  0x5f   : > { %s1391_s6 = sshll.u32 (!%p2282_p8), %s2423_s14, 5  ;;  %s235_s8 = scalar_lea.sflag (!%p2282_p8), [#allocation3], %s2423_s14 }
  0x60   : > { %s2429_s12 = scalar_lea.vmem (!%p2282_p8), [#allocation2], %s1391_s6  ;;  %p2672_p4 = scmp.ne.s32.totalorder (!%p2282_p8), %s2665_s24, 0 }
  0x65   : > { %2173 = dma.done.wait (%p2672_p4), %s235_s8, 512  }
  0x66   : > { %2175 = vsyncadd (%p2672_p4), %s235_s8, 4294966784  ;;  %p2673_p5 = scmp.eq.s32.totalorder %s2263_s22, 0 }
  0x68   : > { %2177 = dma.done.wait (%p2673_p5), [#allocation6], 12288   ;;  %p2674_p8 = pmov %p2673_p5 }
  0x69   : > { %v329_v0 = vld [vmem:[#allocation5 + $0x80] sm:$0xff]  ;;  %v330_v1 = vld [vmem:[#allocation5 + $0x88] sm:$0xff]  ;;  %v331_v2 = vld [vmem:[#allocation5 + $0x90] sm:$0xff]  ;;  %vm287_vm0 = vcmask 1040384   ;;  %vm300_vm1 = vcmask 1046528   ;;  %vm665_vm2 = vcmask 1041409  }
  0x6a   : > { %2179 = vsyncadd (%p2674_p8), [#allocation6], 4294955008  ;;  %v1755_v3 = vpack.c.bf16 %v330_v1, %v329_v0  ;;  %v332_v4 = vld [vmem:[#allocation5 + $0x98] sm:$0xff]  ;;  %v333_v6 = vld [vmem:[#allocation5 + $0xa0] sm:$0xff]  ;;  %vm670_vm3 = vcmask 1043459   ;;  %vm673_vm4 = vcmask 1041408  }
  0x6b   : > { %v1759_v5 = vpack.c.bf16 %v332_v4, %v331_v2  ;;  %v334_v7 = vld [vmem:[#allocation5 + $0xa8] sm:$0xff]  ;;  %v2440_v9 = vld [vmem:[%s2429_s12] sm:$0xff]  ;;  %v335_v10 = vld [vmem:[#allocation5 + $0xb0] sm:$0xff]  ;;  %s2205_s15 = smov 8   ;;  %s2206_s16 = smov 16  }
  0x6c   : > { %1756 = vmatprep.subr.bf16.mxu0 %v1755_v3  ;;  %v1763_v8 = vpack.c.bf16 %v334_v7, %v333_v6  ;;  %v336_v11 = vld [vmem:[#allocation5 + $0xb8] sm:$0xff]  ;;  %1559 = vmatprep.mubr.f32.mxu0 %v2440_v9  ;;  %v337_v13 = vld [vmem:[#allocation5 + $0xc0] sm:$0xff]  ;;  %v338_v14 = vld [vmem:[#allocation5 + $0xc8] sm:$0xff]  ;;  %v281_v33 = vrot.slane %v2440_v9, 1  ;;  %v288_v34 = vrot.slane %v2440_v9, 7  ;;  %s2207_s10 = smov 32  }
  0x6d   : > { %1758 = vmatpush3.bf16.msra.mxu0 %v1755_v3  ;;  %v1767_v12 = vpack.c.bf16 %v336_v11, %v335_v10  ;;  %v1771_v15 = vpack.c.bf16 %v338_v14, %v337_v13  ;;  %v339_v16 = vld [vmem:[#allocation5 + $0xd0] sm:$0xff]  ;;  %v340_v17 = vld [vmem:[#allocation5 + $0xd8] sm:$0xff]  ;;  %v341_v19 = vld [vmem:[#allocation5 + $0xe0] sm:$0xff]  ;;  %s2208_s28 = smov 64   ;;  %s1406_s30 = sshll.u32 %s2263_s22, 9 }
  0x6e   : > { %1760 = vmatprep.subr.bf16.mxu0 %v1759_v5  ;;  %v1775_v18 = vpack.c.bf16 %v340_v17, %v339_v16  ;;  %v342_v20 = vld [vmem:[#allocation5 + $0xe8] sm:$0xff]  ;;  %v343_v22 = vld [vmem:[#allocation5 + $0xf0] sm:$0xff]  ;;  %v344_v23 = vld [vmem:[#allocation5 + $0xf8] sm:$0xff]  ;;  %v298_v39 = vsel %vm287_vm0, %v281_v33, %v288_v34  ;;  %s272_s11 = scalar_lea.vmem [#allocation8], %s1391_s6  ;;  %s1275_s22 = scalar_lea.sflag [#allocation4], %s2423_s14 }
  0x6f   : > { %v1779_v21 = vpack.c.bf16 %v342_v20, %v341_v19  ;;  %v1783_v24 = vpack.c.bf16 %v344_v23, %v343_v22  ;;  %v313_v25 = vld [vmem:[#allocation5] sm:$0xff]  ;;  %v314_v26 = vld [vmem:[#allocation5 + $0x8] sm:$0xff]  ;;  %v315_v28 = vld [vmem:[#allocation5 + $0x10] sm:$0xff]  ;;  %s1289_s17 = sshll.u32 %s272_s11, 4  ;;  %p2675_p0 = scmp.ne.s32.totalorder %s2670_s23, 0  ;;  %s2611_s17 = int_to_ptr.vmem [resolvable:$true] %s1289_s17 }
  0x70   : > { %v1787_v27 = vpack.c.bf16 %v314_v26, %v313_v25  ;;  %v316_v29 = vld [vmem:[#allocation5 + $0x18] sm:$0xff]  ;;  %v2444_v30 = vld [vmem:[%s2429_s12 + $0x8] sm:$0xff]  ;;  %v2447_v32 = vld [vmem:[%s2429_s12 + $0x10] sm:$0xff]  ;;  %s2128_s6 = scalar_lea.vmem %s2611_s17, 512  ;;  %s2210_s24 = smov [#allocation8]  }
  0x71   : > { %1762 = vmatpush3.bf16.msra.mxu0 %v1759_v5  ;;  %v1791_v31 = vpack.c.bf16 %v316_v29, %v315_v28  ;;  %v317_v35 = vld [vmem:[#allocation5 + $0x20] sm:$0xff]  ;;  %v318_v36 = vld [vmem:[#allocation5 + $0x28] sm:$0xff]  ;;  %v2454_v37 = vld [vmem:[%s2429_s12 + $0x18] sm:$0xff]  ;;  %v289_v57 = vrot.slane %v2444_v30, 7  ;;  %v282_v59 = vrot.slane %v2447_v32, 1  ;;  %v291_v60 = vrot.slane %v2447_v32, 7  ;;  %s2609_s12 = scalar_lea.hbm %s2661_s5, %s1406_s30  ;;  %p2129_p11 = scmp.ne.s32.totalorder %s2611_s17, %s2128_s6 }
  0x72   : > { %1764 = vmatprep.subr.bf16.mxu0 %v1763_v8  ;;  %v1795_v38 = vpack.c.bf16 %v318_v36, %v317_v35  ;;  %v319_v40 = vld [vmem:[#allocation5 + $0x30] sm:$0xff]  ;;  %v320_v41 = vld [vmem:[#allocation5 + $0x38] sm:$0xff]  ;;  %v321_v43 = vld [vmem:[#allocation5 + $0x40] sm:$0xff]  ;;  %v292_v0 = vrot.slane %v2454_v37, 7  ;;  %v301_v3 = vrot.slane %v2444_v30, 1  ;;  %v303_v25 = vrot.slane %v2454_v37, 1 }
  0x73   : > { %v1799_v42 = vpack.c.bf16 %v320_v41, %v319_v40  ;;  %v322_v44 = vld [vmem:[#allocation5 + $0x48] sm:$0xff]  ;;  %v323_v46 = vld [vmem:[#allocation5 + $0x50] sm:$0xff]  ;;  %v324_v47 = vld [vmem:[#allocation5 + $0x58] sm:$0xff]  ;;  %v290_v63 = vsel %vm287_vm0, %v288_v34, %v289_v57  ;;  %v299_v2 = vsel %vm287_vm0, %v282_v59, %v291_v60  ;;  %p2130_p2 = pnand %p2129_p11, %p2675_p0  ;;  %s2132_s26 = sshll.u32 %s2210_s24, 4  ;;  %s2133_s26 = int_to_ptr.vmem [resolvable:$false] %s2132_s26 }
  0x74   : > { %v1803_v45 = vpack.c.bf16 %v322_v44, %v321_v43  ;;  %v1807_v48 = vpack.c.bf16 %v324_v47, %v323_v46  ;;  %v325_v49 = vld [vmem:[#allocation5 + $0x60] sm:$0xff]  ;;  %v326_v50 = vld [vmem:[#allocation5 + $0x68] sm:$0xff]  ;;  %v327_v52 = vld [vmem:[#allocation5 + $0x70] sm:$0xff]  ;;  %v293_v6 = vsel %vm287_vm0, %v291_v60, %v292_v0  ;;  %v311_v26 = vsel %vm300_vm1, %v301_v3, %v289_v57  ;;  %p2135_p7 = scmp.lt.s32.totalorder %s2611_s17, %s2133_s26 }
  0x75   : > { %1766 = vmatpush3.bf16.msra.mxu0 %v1763_v8  ;;  %v1811_v51 = vpack.c.bf16 %v326_v50, %v325_v49  ;;  %v328_v53 = vld [vmem:[#allocation5 + $0x78] sm:$0xff]  ;;  %v515_v55 = vld [vmem:[#allocation5 + $0x100] sm:$0xff]  ;;  %v516_v56 = vld [vmem:[#allocation5 + $0x108] sm:$0xff]  ;;  %v302_v8 = vsel %vm300_vm1, %v281_v33, %v301_v3  ;;  %v312_v28 = vsel %vm300_vm1, %v303_v25, %v292_v0  ;;  %p2131_p3 = pneg %p2130_p2 }
  0x76   : > { %1768 = vmatprep.subr.bf16.mxu0 %v1767_v12  ;;  %v1815_v54 = vpack.c.bf16 %v328_v53, %v327_v52  ;;  %v1819_v58 = vpack.c.bf16 %v516_v56, %v515_v55  ;;  %v517_v61 = vld [vmem:[#allocation5 + $0x110] sm:$0xff]  ;;  %v518_v62 = vld [vmem:[#allocation5 + $0x118] sm:$0xff]  ;;  %v519_v4 = vld [vmem:[#allocation5 + $0x120] sm:$0xff] }
  0x77   : > { %v1823_v1 = vpack.c.bf16 %v518_v62, %v517_v61  ;;  %v520_v5 = vld [vmem:[#allocation5 + $0x128] sm:$0xff]  ;;  %v521_v10 = vld [vmem:[#allocation5 + $0x130] sm:$0xff]  ;;  %v522_v11 = vld [vmem:[#allocation5 + $0x138] sm:$0xff] }
  0x78   : > { %v1827_v7 = vpack.c.bf16 %v520_v5, %v519_v4  ;;  %v523_v13 = vld [vmem:[#allocation5 + $0x140] sm:$0xff]  ;;  %v524_v14 = vld [vmem:[#allocation5 + $0x148] sm:$0xff]  ;;  %v525_v16 = vld [vmem:[#allocation5 + $0x150] sm:$0xff] }
  0x79   : > { %1770 = vmatpush3.bf16.msra.mxu0 %v1767_v12  ;;  %v1831_v12 = vpack.c.bf16 %v522_v11, %v521_v10  ;;  %v526_v17 = vld [vmem:[#allocation5 + $0x158] sm:$0xff]  ;;  %v527_v19 = vld [vmem:[#allocation5 + $0x160] sm:$0xff]  ;;  %v528_v20 = vld [vmem:[#allocation5 + $0x168] sm:$0xff] }
  0x7a   : > { %1772 = vmatprep.subr.bf16.mxu0 %v1771_v15  ;;  %v529_v22 = vld [vmem:[#allocation5 + $0x170] sm:$0xff]  ;;  %v530_v23 = vld [vmem:[#allocation5 + $0x178] sm:$0xff]  ;;  %v1395_v29 = vld [vmem:[%s2658_s2] ss:$0 sm:$0xff] }
  0x7d   : > { %1774 = vmatpush3.bf16.msra.mxu0 %v1771_v15  ;;  %v1835_v15 = vpack.c.bf16 %v524_v14, %v523_v13 }
  0x7e   : > { %1776 = vmatprep.subr.bf16.mxu0 %v1775_v18 }
  0x81   : > { %1778 = vmatpush3.bf16.msra.mxu0 %v1775_v18  ;;  %v1839_v18 = vpack.c.bf16 %v526_v17, %v525_v16  ;;  %v823_v17 = vld [vmem:[#allocation7 + $0x80] sm:$0xff] }
  0x82   : > { %1780 = vmatprep.subr.bf16.mxu0 %v1779_v21 }
  0x85   : > { %1782 = vmatpush3.bf16.msra.mxu0 %v1779_v21  ;;  %v1843_v21 = vpack.c.bf16 %v528_v20, %v527_v19  ;;  %v825_v20 = vld [vmem:[#allocation7 + $0x90] sm:$0xff] }
  0x86   : > { %1784 = vmatprep.subr.bf16.mxu0 %v1783_v24 }
  0x89   : > { %1786 = vmatpush3.bf16.msra.mxu0 %v1783_v24  ;;  %v1847_v24 = vpack.c.bf16 %v530_v23, %v529_v22  ;;  %v827_v23 = vld [vmem:[#allocation7 + $0xa0] sm:$0xff] }
  0x8a   : > { %1788 = vmatprep.subr.bf16.mxu0 %v1787_v27 }
  0x8c   : > { %1560 = vmatmul.mubr.f32.vlgmr.msra.gmra.mrb[0].mxu0 %v2444_v30 }
  0x8d   : > { %1790 = vmatpush3.bf16.msra.mxu0 %v1787_v27  ;;  %1562 = vmatprep.mubr.f32.mxu0 %v2447_v32  ;;  %v304_v27 = vsel %vm300_vm1, %v282_v59, %v303_v25 }
  0x8e   : > { %1792 = vmatprep.subr.bf16.mxu0 %v1791_v31 }
  0x90   : > { %1563 = vmatmul.mubr.f32.gmra.mrb[2].mxu0 %v2454_v37 }
  0x91   : > { %1794 = vmatpush3.bf16.msra.mxu0 %v1791_v31  ;;  %1597 = vmatprep.mubr.f32.mxu0 %v298_v39 }
  0x92   : > { %1796 = vmatprep.subr.bf16.mxu0 %v1795_v38 }
  0x95   : > { %1798 = vmatpush3.bf16.msra.mxu0 %v1795_v38 }
  0x96   : > { %1800 = vmatprep.subr.bf16.mxu0 %v1799_v42 }
  0x99   : > { %1802 = vmatpush3.bf16.msra.mxu0 %v1799_v42 }
  0x9a   : > { %1804 = vmatprep.subr.bf16.mxu0 %v1803_v45 }
  0x9d   : > { %1806 = vmatpush3.bf16.msra.mxu0 %v1803_v45 }
  0x9e   : > { %1808 = vmatprep.subr.bf16.mxu0 %v1807_v48 }
  0xa1   : > { %1810 = vmatpush3.bf16.msra.mxu0 %v1807_v48 }
  0xa2   : > { %1812 = vmatprep.subr.bf16.mxu0 %v1811_v51 }
  0xa5   : > { %1814 = vmatpush3.bf16.msra.mxu0 %v1811_v51 }
  0xa6   : > { %1816 = vmatprep.subr.bf16.mxu0 %v1815_v54 }
  0xa9   : > { %1818 = vmatpush3.bf16.msra.mxu0 %v1815_v54 }
  0xaa   : > { %1820 = vmatprep.subr.bf16.mxu0 %v1819_v58 }
  0xac   : > { %1598 = vmatmul.mubr.f32.vlgmr.msra.gmra.mrb[0].mxu0 %v290_v63 }
  0xad   : > { %1822 = vmatpush3.bf16.msra.mxu0 %v1819_v58  ;;  %1600 = vmatprep.mubr.f32.mxu0 %v299_v2 }
  0xae   : > { %1824 = vmatprep.subr.bf16.mxu0 %v1823_v1 }
  0xb0   : > { %1601 = vmatmul.mubr.f32.gmra.mrb[2].mxu0 %v293_v6 }
  0xb1   : > { %1826 = vmatpush3.bf16.msra.mxu0 %v1823_v1  ;;  %1635 = vmatprep.mubr.f32.mxu0 %v302_v8 }
  0xb2   : > { %1828 = vmatprep.subr.bf16.mxu0 %v1827_v7 }
  0xb5   : > { %1830 = vmatpush3.bf16.msra.mxu0 %v1827_v7 }
  0xb6   : > { %1832 = vmatprep.subr.bf16.mxu0 %v1831_v12 }
  0xb9   : > { %1834 = vmatpush3.bf16.msra.mxu0 %v1831_v12 }
  0xba   : > { %1836 = vmatprep.subr.bf16.mxu0 %v1835_v15 }
  0xbd   : > { %1838 = vmatpush3.bf16.msra.mxu0 %v1835_v15 }
  0xbe   : > { %1840 = vmatprep.subr.bf16.mxu0 %v1839_v18 }
  0xc1   : > { %1842 = vmatpush3.bf16.msra.mxu0 %v1839_v18  ;;  %v824_v18 = vld [vmem:[#allocation7 + $0x88] sm:$0xff] }
  0xc2   : > { %1844 = vmatprep.subr.bf16.mxu0 %v1843_v21  ;;  %v1851_v19 = vpack.c.bf16 %v824_v18, %v823_v17 }
  0xc4   : > { %1852 = vmatprep.subr.bf16.mxu1 %v1851_v19 }
  0xc5   : > { %1846 = vmatpush3.bf16.msra.mxu0 %v1843_v21  ;;  %1854 = vmatpush3.bf16.msra.mxu1 %v1851_v19  ;;  %v826_v21 = vld [vmem:[#allocation7 + $0x98] sm:$0xff] }
  0xc6   : > { %1848 = vmatprep.subr.bf16.mxu0 %v1847_v24  ;;  %v1855_v22 = vpack.c.bf16 %v826_v21, %v825_v20 }
  0xc8   : > { %1856 = vmatprep.subr.bf16.mxu1 %v1855_v22 }
  0xc9   : > { %1850 = vmatpush3.bf16.msra.mxu0 %v1847_v24  ;;  %1858 = vmatpush3.bf16.msra.mxu1 %v1855_v22  ;;  %v828_v24 = vld [vmem:[#allocation7 + $0xa8] sm:$0xff] }
  0xca   : > { %v1859_v25 = vpack.c.bf16 %v828_v24, %v827_v23  ;;  %v809_v24 = vld [vmem:[#allocation7 + $0x10] sm:$0xff] }
  0xcc   : > { %1636 = vmatmul.mubr.f32.vlgmr.msra.gmra.mrb[0].mxu0 %v311_v26  ;;  %1860 = vmatprep.subr.bf16.mxu1 %v1859_v25 }
  0xcd   : > { %1638 = vmatprep.mubr.f32.mxu0 %v304_v27  ;;  %1862 = vmatpush3.bf16.msra.mxu1 %v1859_v25  ;;  %v810_v25 = vld [vmem:[#allocation7 + $0x18] sm:$0xff] }
  0xd0   : > { %1639 = vmatmul.mubr.f32.gmra.mrb[2].mxu0 %v312_v28  ;;  %v829_v28 = vld [vmem:[#allocation7 + $0xb0] sm:$0xff] }
 0x19f   : > { %v1637_v31 = vpop.f32.mrb[0].mxu0 }
 0x1a0   : > { %v2478_v33 = vadd.f32 %v1637_v31, %v1395_v29  ;;  %v597_v34 = vpop.f32.mrb[1].mxu0  ;;  %v831_v31 = vld [vmem:[#allocation7 + $0xc0] sm:$0xff] }
 0x1a1   : > { %v2480_v35 = vadd.f32 %v1395_v29, %v597_v34 }
 0x1a2   : > { %v646_v36 = vmul.f32 %v2478_v33, %v2478_v33 }
 0x1a3   : > { %v631_v38 = vadd.f32 %v2478_v33, %v2480_v35  ;;  %v645_v39 = vmul.f32 %v2480_v35, %v2480_v35  ;;  %v1640_v40 = vpop.f32.mrb[2].mxu0 }
 0x1a4   : > { %v2488_v41 = vadd.f32 %v1640_v40, %v1395_v29  ;;  %v607_v42 = vpop.f32.mrb[3].mxu0  ;;  %v834_v40 = vld [vmem:[#allocation7 + $0xd8] sm:$0xff] }
 0x1a5   : > { %v632_v43 = vrot.slane %v631_v38, 4  ;;  %v649_v44 = vadd.f32 %v646_v36, %v645_v39  ;;  %v2490_v45 = vadd.f32 %v1395_v29, %v607_v42  ;;  %v830_v29 = vld [vmem:[#allocation7 + $0xb8] sm:$0xff]  ;;  %v832_v36 = vld [vmem:[#allocation7 + $0xc8] sm:$0xff]  ;;  %v833_v39 = vld [vmem:[#allocation7 + $0xd0] sm:$0xff] }
 0x1a6   : > { %v648_v46 = vmul.f32 %v2488_v41, %v2488_v41  ;;  %v1863_v34 = vpack.c.bf16 %v830_v29, %v829_v28  ;;  %v1871_v42 = vpack.c.bf16 %v834_v40, %v833_v39  ;;  %v1887_v29 = vpack.c.bf16 %v810_v25, %v809_v24  ;;  %v813_v40 = vld [vmem:[#allocation7 + $0x30] sm:$0xff]  ;;  %v1021_v24 = vld [vmem:[#allocation7 + $0x160] sm:$0xff]  ;;  %v1022_v25 = vld [vmem:[#allocation7 + $0x168] sm:$0xff] }
 0x1a7   : > { %v633_v47 = vadd.f32 %v632_v43, %v631_v38  ;;  %v650_v48 = vrot.slane %v649_v44, 4  ;;  %v638_v49 = vadd.f32 %v2488_v41, %v2490_v45  ;;  %v647_v50 = vmul.f32 %v2490_v45, %v2490_v45  ;;  %v835_v43 = vld [vmem:[#allocation7 + $0xe0] sm:$0xff] }
 0x1a8   : > { %v1867_v38 = vpack.c.bf16 %v832_v36, %v831_v31  ;;  %1864 = vmatprep.subr.bf16.mxu1 %v1863_v34  ;;  %v812_v36 = vld [vmem:[#allocation7 + $0x28] sm:$0xff] }
 0x1a9   : > { %v634_v51 = vrot.slane %v633_v47, 2  ;;  %v651_v52 = vadd.f32 %v650_v48, %v649_v44  ;;  %v639_v53 = vrot.slane %v638_v49, 4  ;;  %v656_v54 = vadd.f32 %v648_v46, %v647_v50  ;;  %1866 = vmatpush3.bf16.msra.mxu1 %v1863_v34  ;;  %v836_v44 = vld [vmem:[#allocation7 + $0xe8] sm:$0xff]  ;;  %v838_v48 = vld [vmem:[#allocation7 + $0xf8] sm:$0xff]  ;;  %v807_v50 = vld [vmem:[#allocation7] sm:$0xff] }
 0x1aa   : > { %1868 = vmatprep.subr.bf16.mxu1 %v1867_v38  ;;  %v1875_v46 = vpack.c.bf16 %v836_v44, %v835_v43  ;;  %v811_v34 = vld [vmem:[#allocation7 + $0x20] sm:$0xff] }
 0x1ab   : > { %v652_v55 = vrot.slane %v651_v52, 2  ;;  %v640_v56 = vadd.f32 %v639_v53, %v638_v49  ;;  %v657_v57 = vrot.slane %v656_v54, 4  ;;  %v635_v58 = vadd.f32 %v634_v51, %v633_v47  ;;  %v837_v47 = vld [vmem:[#allocation7 + $0xf0] sm:$0xff]  ;;  %v808_v51 = vld [vmem:[#allocation7 + $0x8] sm:$0xff] }
 0x1ac   : > { %v1879_v49 = vpack.c.bf16 %v838_v48, %v837_v47  ;;  %v1891_v39 = vpack.c.bf16 %v812_v36, %v811_v34  ;;  %v816_v47 = vld [vmem:[#allocation7 + $0x48] sm:$0xff]  ;;  %v1396_v36 = vld [vmem:[%s2660_s4] ss:$0 sm:$0xff] }
 0x1ad   : > { %v641_v59 = vrot.slane %v640_v56, 2  ;;  %v658_v60 = vadd.f32 %v657_v57, %v656_v54  ;;  %v653_v61 = vadd.f32 %v652_v55, %v651_v52  ;;  %v636_v0 = vrot.slane %v635_v58, 1  ;;  %1870 = vmatpush3.bf16.msra.mxu1 %v1867_v38 }
 0x1ae   : > { %1872 = vmatprep.subr.bf16.mxu1 %v1871_v42  ;;  %v1883_v52 = vpack.c.bf16 %v808_v51, %v807_v50  ;;  %v818_v50 = vld [vmem:[#allocation7 + $0x58] sm:$0xff] }
 0x1af   : > { %v642_v62 = vadd.f32 %v641_v59, %v640_v56  ;;  %v659_v63 = vrot.slane %v658_v60, 2  ;;  %v654_v2 = vrot.slane %v653_v61, 1  ;;  %v637_v6 = vadd.f32 %v636_v0, %v635_v58 }
 0x1b0   : > { %v2209_v56 = vmov 1966171168   ;;  %v699_v58 = vlaneseq }
 0x1b1   : > { %v643_v1 = vrot.slane %v642_v62, 1  ;;  %v660_v3 = vadd.f32 %v659_v63, %v658_v60  ;;  %v655_v7 = vadd.f32 %v654_v2, %v653_v61  ;;  %1874 = vmatpush3.bf16.msra.mxu1 %v1871_v42  ;;  %v697_v57 = vunpack.c.l.s4 %v2209_v56  ;;  %v814_v42 = vld [vmem:[#allocation7 + $0x38] sm:$0xff] }
 0x1b2   : > { %1876 = vmatprep.subr.bf16.mxu1 %v1875_v46  ;;  %v1895_v44 = vpack.c.bf16 %v814_v42, %v813_v40  ;;  %v822_v56 = vld [vmem:[#allocation7 + $0x78] sm:$0xff] }
 0x1b3   : > { %v644_v4 = vadd.f32 %v643_v1, %v642_v62  ;;  %v661_v5 = vrot.slane %v660_v3, 1  ;;  %v698_v61 = vunpack.c.0.s8 %v697_v57  ;;  %v700_v62 = vshrl.u32 %v699_v58, 7  ;;  %v1009_v58 = vld [vmem:[#allocation7 + $0x100] sm:$0xff] }
 0x1b5   : > { %v662_v8 = vadd.f32 %v661_v5, %v660_v3  ;;  %v666_v10 = vsel %vm665_vm2, %v644_v4, %v637_v6  ;;  %1878 = vmatpush3.bf16.msra.mxu1 %v1875_v46  ;;  %v2505_v1 = vsub.s32 %v698_v61, %v700_v62  ;;  %v2509_v5 = vsub.s32 0, %v700_v62  ;;  %v815_v46 = vld [vmem:[#allocation7 + $0x40] sm:$0xff]  ;;  %v1011_v62 = vld [vmem:[#allocation7 + $0x110] sm:$0xff] }
 0x1b6   : > { %1880 = vmatprep.subr.bf16.mxu1 %v1879_v49  ;;  %v1899_v48 = vpack.c.bf16 %v816_v47, %v815_v46 }
 0x1b7   : > { %v671_v11 = vsel %vm670_vm3, %v662_v8, %v655_v7 }
 0x1b8   : > { %v674_v12 = vsel %vm673_vm4, %v666_v10, %v671_v11 }
 0x1b9   : > { %675 = vrot.lane.b32.xlu0 %v674_v12, %s2205_s15  ;;  %1882 = vmatpush3.bf16.msra.mxu1 %v1879_v49  ;;  %v817_v49 = vld [vmem:[#allocation7 + $0x50] sm:$0xff] }
 0x1ba   : > { %1884 = vmatprep.subr.bf16.mxu1 %v1883_v52  ;;  %v1903_v51 = vpack.c.bf16 %v818_v50, %v817_v49 }
 0x22b   : > { %v676_v13 = vpop.permute.xlu0 %675 }
 0x22c   : > { %v677_v14 = vadd.f32 %v676_v13, %v674_v12 }
 0x22e   : > { %678 = vrot.lane.b32.xlu0 %v677_v14, %s2206_s16 }
 0x2a0   : > { %v679_v15 = vpop.permute.xlu0 %678 }
 0x2a1   : > { %v680_v16 = vadd.f32 %v679_v15, %v677_v14 }
 0x2a3   : > { %681 = vrot.lane.b32.xlu1 %v680_v16, %s2207_s10 }
 0x315   : > { %v682_v26 = vpop.permute.xlu1 %681 }
 0x316   : > { %v683_v27 = vadd.f32 %v682_v26, %v680_v16 }
 0x318   : > { %684 = vrot.lane.b32.xlu1 %v683_v27, %s2208_s28 }
 0x38a   : > { %v685_v53 = vpop.permute.xlu1 %684 }
 0x38b   : > { %v686_v54 = vadd.f32 %v685_v53, %v683_v27  ;;  %v820_v53 = vld [vmem:[#allocation7 + $0x68] sm:$0xff] }
 0x38d   : > { %v687_v55 = vmul.f32 0.00390625, %v686_v54 }
 0x38f   : > { %v688_v59 = vmul.f32 %v687_v55, %v687_v55  ;;  %v702_v2 = vrot.slane %v687_v55, %v2505_v1 }
 0x391   : > { %v690_v60 = vrot.slane %v688_v59, 6  ;;  %v703_v3 = vcombine.high %v702_v2, %v702_v2  ;;  %v710_v4 = vrot.slane %v702_v2, %v2505_v1  ;;  %v1010_v59 = vld [vmem:[#allocation7 + $0x108] sm:$0xff] }
 0x393   : > { %v692_v63 = vsub.f32 %v687_v55, %v690_v60  ;;  %v717_v7 = vrot.slane %v703_v3, %v2505_v1  ;;  %v721_v10 = vrot.slane %v710_v4, %v2509_v5  ;;  %v821_v55 = vld [vmem:[#allocation7 + $0x70] sm:$0xff]  ;;  %v1915_v60 = vpack.c.bf16 %v1010_v59, %v1009_v58 }
 0x394   : > { %v1911_v57 = vpack.c.bf16 %v822_v56, %v821_v55 }
 0x395   : > { %v693_v0 = vadd.f32 1e-05, %v692_v63  ;;  %v725_v14 = vrot.slane %v717_v7, %v2509_v5  ;;  %v728_v16 = vsub.f32 %v2480_v35, %v721_v10  ;;  %v729_v18 = vsub.f32 %v2478_v33, %v721_v10  ;;  %v1012_v63 = vld [vmem:[#allocation7 + $0x118] sm:$0xff]  ;;  %v1013_v7 = vld [vmem:[#allocation7 + $0x120] sm:$0xff] }
 0x396   : > { %v1919_v3 = vpack.c.bf16 %v1012_v63, %v1011_v62 }
 0x397   : > { %2038 = vrsqrt.f32 %v693_v0  ;;  %v730_v22 = vsub.f32 %v2490_v45, %v725_v14  ;;  %v731_v26 = vsub.f32 %v2488_v41, %v725_v14  ;;  %v1015_v14 = vld [vmem:[#allocation7 + $0x130] sm:$0xff] }
 0x3a1   : > { %v2039_v6 = vpop.eup %2038 }
 0x3a2   : > { %v739_v8 = vrot.slane %v2039_v6, %v2505_v1 }
 0x3a4   : > { %v747_v11 = vrot.slane %v739_v8, %v2505_v1  ;;  %v740_v12 = vcombine.high %v739_v8, %v739_v8  ;;  %v1014_v8 = vld [vmem:[#allocation7 + $0x128] sm:$0xff] }
 0x3a6   : > { %v755_v13 = vcombine.high %v747_v11, %v747_v11  ;;  %v754_v15 = vrot.slane %v740_v12, %v2505_v1  ;;  %v1923_v12 = vpack.c.bf16 %v1014_v8, %v1013_v7 }
 0x3a8   : > { %v760_v17 = vrot.slane %v755_v13, %v2509_v5  ;;  %v756_v19 = vcombine.high %v754_v15, %v754_v15  ;;  %v1016_v15 = vld [vmem:[#allocation7 + $0x138] sm:$0xff] }
 0x3aa   : > { %v767_v20 = vmul.f32 %v760_v17, %v728_v16  ;;  %v768_v21 = vmul.f32 %v760_v17, %v729_v18  ;;  %v764_v23 = vrot.slane %v756_v19, %v2509_v5  ;;  %v1927_v17 = vpack.c.bf16 %v1016_v15, %v1015_v14  ;;  %v1017_v18 = vld [vmem:[#allocation7 + $0x140] sm:$0xff]  ;;  %v1018_v19 = vld [vmem:[#allocation7 + $0x148] sm:$0xff] }
 0x3ac   : > { %v2523_v27 = vmax.f32 %v767_v20, 0.0  ;;  %v2525_v28 = vmax.f32 %v768_v21, 0.0  ;;  %v769_v35 = vmul.f32 %v764_v23, %v730_v22  ;;  %v770_v31 = vmul.f32 %v764_v23, %v731_v26  ;;  %v1019_v21 = vld [vmem:[#allocation7 + $0x150] sm:$0xff]  ;;  %v1020_v22 = vld [vmem:[#allocation7 + $0x158] sm:$0xff] }
 0x3ad   : > { %v1931_v20 = vpack.c.bf16 %v1018_v19, %v1017_v18  ;;  %v1935_v23 = vpack.c.bf16 %v1020_v22, %v1019_v21  ;;  %v1939_v26 = vpack.c.bf16 %v1022_v25, %v1021_v24 }
 0x3ae   : > { %1673 = vmatprep.mubr.f32.mxu1 %v2523_v27  ;;  %v2528_v33 = vmax.f32 %v769_v35, 0.0  ;;  %v777_v45 = vrot.slane %v2523_v27, 1  ;;  %v783_v38 = vrot.slane %v2523_v27, 7  ;;  %v2534_v41 = vmax.f32 %v770_v31, 0.0  ;;  %v1023_v27 = vld [vmem:[#allocation7 + $0x170] sm:$0xff] }
 0x3af   : > { %1674 = vmatmul.mubr.f32.vlgmr.msra.gmra.mrb[0].mxu1 %v2525_v28  ;;  %v784_v61 = vrot.slane %v2525_v28, 7  ;;  %v795_v11 = vrot.slane %v2525_v28, 1  ;;  %v1024_v28 = vld [vmem:[#allocation7 + $0x178] sm:$0xff] }
 0x3b0   : > { %1886 = vmatpush3.bf16.msra.mxu1 %v1883_v52  ;;  %1676 = vmatprep.mubr.f32.mxu1 %v2528_v33  ;;  %v793_v43 = vsel %vm287_vm0, %v777_v45, %v783_v38  ;;  %v819_v52 = vld [vmem:[#allocation7 + $0x60] sm:$0xff]  ;;  %v778_v0 = vrot.slane %v2528_v33, 1  ;;  %v786_v2 = vrot.slane %v2528_v33, 7  ;;  %v787_v6 = vrot.slane %v2534_v41, 7 }
 0x3b1   : > { %1888 = vmatprep.subr.bf16.mxu1 %v1887_v29  ;;  %v1907_v54 = vpack.c.bf16 %v820_v53, %v819_v52  ;;  %v785_v4 = vsel %vm287_vm0, %v783_v38, %v784_v61  ;;  %v796_v16 = vsel %vm300_vm1, %v777_v45, %v795_v11  ;;  %v1943_v35 = vpack.c.bf16 %v1024_v28, %v1023_v27 }
 0x3b2   : > { %v794_v10 = vsel %vm287_vm0, %v778_v0, %v786_v2  ;;  %v788_v13 = vsel %vm287_vm0, %v786_v2, %v787_v6  ;;  %v805_v31 = vsel %vm300_vm1, %v795_v11, %v784_v61 }
 0x3b3   : > { %1677 = vmatmul.mubr.f32.gmra.mrb[2].mxu1 %v2534_v41 }
 0x3b4   : > { %1890 = vmatpush3.bf16.msra.mxu1 %v1887_v29  ;;  %1711 = vmatprep.mubr.f32.mxu1 %v793_v43  ;;  %v797_v29 = vrot.slane %v2534_v41, 1 }
 0x3b5   : > { %1892 = vmatprep.subr.bf16.mxu1 %v1891_v39 }
 0x3b6   : > { %v798_v33 = vsel %vm300_vm1, %v778_v0, %v797_v29  ;;  %v806_v34 = vsel %vm300_vm1, %v797_v29, %v787_v6 }
 0x3b8   : > { %1894 = vmatpush3.bf16.msra.mxu1 %v1891_v39 }
 0x3b9   : > { %1896 = vmatprep.subr.bf16.mxu1 %v1895_v44 }
 0x3bc   : > { %1898 = vmatpush3.bf16.msra.mxu1 %v1895_v44 }
 0x3bd   : > { %1900 = vmatprep.subr.bf16.mxu1 %v1899_v48 }
 0x3c0   : > { %1902 = vmatpush3.bf16.msra.mxu1 %v1899_v48 }
 0x3c1   : > { %1904 = vmatprep.subr.bf16.mxu1 %v1903_v51 }
 0x3c4   : > { %1906 = vmatpush3.bf16.msra.mxu1 %v1903_v51 }
 0x3c5   : > { %1908 = vmatprep.subr.bf16.mxu1 %v1907_v54 }
 0x3c8   : > { %1910 = vmatpush3.bf16.msra.mxu1 %v1907_v54 }
 0x3c9   : > { %1912 = vmatprep.subr.bf16.mxu1 %v1911_v57 }
 0x3cc   : > { %1914 = vmatpush3.bf16.msra.mxu1 %v1911_v57 }
 0x3cd   : > { %1916 = vmatprep.subr.bf16.mxu1 %v1915_v60 }
 0x3cf   : > { %1712 = vmatmul.mubr.f32.vlgmr.msra.gmra.mrb[0].mxu1 %v785_v4 }
 0x3d0   : > { %1714 = vmatprep.mubr.f32.mxu1 %v794_v10  ;;  %1918 = vmatpush3.bf16.msra.mxu1 %v1915_v60 }
 0x3d1   : > { %1920 = vmatprep.subr.bf16.mxu1 %v1919_v3 }
 0x3d3   : > { %1715 = vmatmul.mubr.f32.gmra.mrb[2].mxu1 %v788_v13 }
 0x3d4   : > { %1922 = vmatpush3.bf16.msra.mxu1 %v1919_v3  ;;  %1749 = vmatprep.mubr.f32.mxu1 %v796_v16 }
 0x3d5   : > { %1924 = vmatprep.subr.bf16.mxu1 %v1923_v12 }
 0x3d8   : > { %1926 = vmatpush3.bf16.msra.mxu1 %v1923_v12 }
 0x3d9   : > { %1928 = vmatprep.subr.bf16.mxu1 %v1927_v17 }
 0x3dc   : > { %1930 = vmatpush3.bf16.msra.mxu1 %v1927_v17 }
 0x3dd   : > { %1932 = vmatprep.subr.bf16.mxu1 %v1931_v20 }
 0x3e0   : > { %1934 = vmatpush3.bf16.msra.mxu1 %v1931_v20 }
 0x3e1   : > { %1936 = vmatprep.subr.bf16.mxu1 %v1935_v23 }
 0x3e4   : > { %1938 = vmatpush3.bf16.msra.mxu1 %v1935_v23 }
 0x3e5   : > { %1940 = vmatprep.subr.bf16.mxu1 %v1939_v26 }
 0x3e8   : > { %1942 = vmatpush3.bf16.msra.mxu1 %v1939_v26 }
 0x3e9   : > { %1944 = vmatprep.subr.bf16.mxu1 %v1943_v35 }
 0x3ec   : > { %1946 = vmatpush3.bf16.msra.mxu1 %v1943_v35 }
 0x3ef   : > { %1750 = vmatmul.mubr.f32.vlgmr.msra.gmra.mrb[0].mxu1 %v805_v31 }
 0x3f0   : > { %1752 = vmatprep.mubr.f32.mxu1 %v798_v33 }
 0x3f3   : > { %1753 = vmatmul.mubr.f32.gmra.mrb[2].mxu1 %v806_v34 }
 0x4c2   : > { %v1751_v45 = vpop.f32.mrb[0].mxu1 }
 0x4c3   : > { %v2558_v38 = vadd.f32 %v1751_v45, %v1396_v36  ;;  %v1091_v39 = vpop.f32.mrb[1].mxu1 }
 0x4c4   : > { %v2560_v40 = vadd.f32 %v1396_v36, %v1091_v39 }
 0x4c5   : > { %v1140_v41 = vmul.f32 %v2558_v38, %v2558_v38 }
 0x4c6   : > { %v1125_v42 = vadd.f32 %v2558_v38, %v2560_v40  ;;  %v1139_v43 = vmul.f32 %v2560_v40, %v2560_v40  ;;  %v1754_v44 = vpop.f32.mrb[2].mxu1 }
 0x4c7   : > { %v2568_v46 = vadd.f32 %v1754_v44, %v1396_v36  ;;  %v1101_v47 = vpop.f32.mrb[3].mxu1 }
 0x4c8   : > { %v1126_v48 = vrot.slane %v1125_v42, 4  ;;  %v1143_v49 = vadd.f32 %v1140_v41, %v1139_v43  ;;  %v2570_v50 = vadd.f32 %v1396_v36, %v1101_v47 }
 0x4c9   : > { %v1142_v51 = vmul.f32 %v2568_v46, %v2568_v46 }
 0x4ca   : > { %v1127_v52 = vadd.f32 %v1126_v48, %v1125_v42  ;;  %v1144_v53 = vrot.slane %v1143_v49, 4  ;;  %v1132_v54 = vadd.f32 %v2568_v46, %v2570_v50  ;;  %v1141_v55 = vmul.f32 %v2570_v50, %v2570_v50 }
 0x4cc   : > { %v1128_v56 = vrot.slane %v1127_v52, 2  ;;  %v1145_v57 = vadd.f32 %v1144_v53, %v1143_v49  ;;  %v1133_v58 = vrot.slane %v1132_v54, 4  ;;  %v1150_v59 = vadd.f32 %v1142_v51, %v1141_v55 }
 0x4ce   : > { %v1146_v60 = vrot.slane %v1145_v57, 2  ;;  %v1134_v61 = vadd.f32 %v1133_v58, %v1132_v54  ;;  %v1151_v62 = vrot.slane %v1150_v59, 4  ;;  %v1129_v63 = vadd.f32 %v1128_v56, %v1127_v52 }
 0x4d0   : > { %v1135_v0 = vrot.slane %v1134_v61, 2  ;;  %v1152_v2 = vadd.f32 %v1151_v62, %v1150_v59  ;;  %v1147_v3 = vadd.f32 %v1146_v60, %v1145_v57  ;;  %v1130_v7 = vrot.slane %v1129_v63, 1 }
 0x4d2   : > { %v1136_v4 = vadd.f32 %v1135_v0, %v1134_v61  ;;  %v1153_v6 = vrot.slane %v1152_v2, 2  ;;  %v1148_v10 = vrot.slane %v1147_v3, 1  ;;  %v1131_v14 = vadd.f32 %v1130_v7, %v1129_v63 }
 0x4d4   : > { %v1137_v8 = vrot.slane %v1136_v4, 1  ;;  %v1154_v11 = vadd.f32 %v1153_v6, %v1152_v2  ;;  %v1149_v15 = vadd.f32 %v1148_v10, %v1147_v3 }
 0x4d6   : > { %v1138_v12 = vadd.f32 %v1137_v8, %v1136_v4  ;;  %v1155_v13 = vrot.slane %v1154_v11, 1 }
 0x4d8   : > { %v1156_v16 = vadd.f32 %v1155_v13, %v1154_v11  ;;  %v1159_v17 = vsel %vm665_vm2, %v1138_v12, %v1131_v14 }
 0x4da   : > { %v1163_v18 = vsel %vm670_vm3, %v1156_v16, %v1149_v15 }
 0x4db   : > { %v1165_v19 = vsel %vm673_vm4, %v1159_v17, %v1163_v18 }
 0x4dc   : > { %1166 = vrot.lane.b32.xlu0 %v1165_v19, %s2205_s15 }
 0x54e   : > { %v1167_v20 = vpop.permute.xlu0 %1166 }
 0x54f   : > { %v1168_v21 = vadd.f32 %v1167_v20, %v1165_v19 }
 0x551   : > { %1169 = vrot.lane.b32.xlu1 %v1168_v21, %s2206_s16  ;;  %s2134_s16 = scalar_lea.vmem %s2133_s26, 1024 }
 0x552   : > { %p2136_p9 = scmp.lt.s32.totalorder %s2134_s16, %s2128_s6 }
 0x554   : > { %p2137_p12 = por %p2136_p9, %p2135_p7 }
 0x556   : > { %p2138_p1 = pnand %p2137_p12, %p2131_p3 }
 0x5c3   : > { %v1170_v22 = vpop.permute.xlu1 %1169 }
 0x5c4   : > { %v1171_v23 = vadd.f32 %v1170_v22, %v1168_v21 }
 0x5c6   : > { %1172 = vrot.lane.b32.xlu0 %v1171_v23, %s2207_s10 }
 0x638   : > { %v1173_v24 = vpop.permute.xlu0 %1172 }
 0x639   : > { %v1174_v25 = vadd.f32 %v1173_v24, %v1171_v23 }
 0x63b   : > { %1175 = vrot.lane.b32.xlu1 %v1174_v25, %s2208_s28 }
 0x6ad   : > { %v1176_v26 = vpop.permute.xlu1 %1175 }
 0x6ae   : > { %v1177_v27 = vadd.f32 %v1176_v26, %v1174_v25 }
 0x6b0   : > { %v1178_v28 = vmul.f32 0.00390625, %v1177_v27 }
 0x6b2   : > { %v1179_v35 = vmul.f32 %v1178_v28, %v1178_v28  ;;  %v1193_v34 = vrot.slane %v1178_v28, %v2505_v1 }
 0x6b4   : > { %v1181_v29 = vrot.slane %v1179_v35, 6  ;;  %v1194_v36 = vcombine.high %v1193_v34, %v1193_v34  ;;  %v1201_v45 = vrot.slane %v1193_v34, %v2505_v1 }
 0x6b6   : > { %v1183_v31 = vsub.f32 %v1178_v28, %v1181_v29  ;;  %v1208_v41 = vrot.slane %v1194_v36, %v2505_v1  ;;  %v1212_v43 = vrot.slane %v1201_v45, %v2509_v5 }
 0x6b8   : > { %v1184_v33 = vadd.f32 1e-05, %v1183_v31  ;;  %v1216_v48 = vrot.slane %v1208_v41, %v2509_v5  ;;  %v1219_v52 = vsub.f32 %v2560_v40, %v1212_v43  ;;  %v1220_v53 = vsub.f32 %v2558_v38, %v1212_v43 }
 0x6ba   : > { %2040 = vrsqrt.f32 %v1184_v33  ;;  %v1221_v56 = vsub.f32 %v2570_v50, %v1216_v48  ;;  %v1222_v57 = vsub.f32 %v2568_v46, %v1216_v48 }
 0x6c4   : > { %v2041_v39 = vpop.eup %2040 }
 0x6c5   : > { %v1230_v42 = vrot.slane %v2041_v39, %v2505_v1 }
 0x6c7   : > { %v1231_v44 = vcombine.high %v1230_v42, %v1230_v42  ;;  %v1238_v47 = vrot.slane %v1230_v42, %v2505_v1 }
 0x6c9   : > { %v1245_v49 = vrot.slane %v1231_v44, %v2505_v1  ;;  %v1246_v51 = vcombine.high %v1238_v47, %v1238_v47 }
 0x6cb   : > { %v1247_v54 = vcombine.high %v1245_v49, %v1245_v49  ;;  %v1251_v55 = vrot.slane %v1246_v51, %v2509_v5 }
 0x6cd   : > { %v1255_v58 = vrot.slane %v1247_v54, %v2509_v5  ;;  %v1258_v59 = vmul.f32 %v1251_v55, %v1219_v52  ;;  %v1259_v60 = vmul.f32 %v1251_v55, %v1220_v53 }
 0x6cf   : > { %v1260_v61 = vmul.f32 %v1255_v58, %v1221_v56  ;;  %v1261_v62 = vmul.f32 %v1255_v58, %v1222_v57  ;;  %v1262_v1 = vadd.f32 %v1258_v59, %v2440_v9  ;;  %v1263_v63 = vadd.f32 %v1259_v60, %v2444_v30 }
 0x6d1   : > { %v1264_v38 = vadd.f32 %v1260_v61, %v2447_v32  ;;  %v1265_v40 = vadd.f32 %v1261_v62, %v2454_v37  ;;  %v1266_v46 = vmax.f32 %v1262_v1, 0.0  ;;  %v1267_v5 = vmax.f32 %v1263_v63, 0.0 }
 0x6d3   : > { %v1268_v9 = vmax.f32 %v1264_v38, 0.0  ;;  %v1269_v50 = vmax.f32 %v1265_v40, 0.0  ;;  %1270 = vst [vmem:[%s272_s11] sm:$0xff] %v1266_v46  ;;  %1271 = vst [vmem:[%s272_s11 + $0x8] sm:$0xff] %v1267_v5 }
 0x6d5   : > { %1272 = vst [vmem:[%s272_s11 + $0x10] sm:$0xff] %v1268_v9  ;;  %1273 = vst [vmem:[%s272_s11 + $0x18] sm:$0xff] %v1269_v50 }
 0x6d6   : > { %2141 = shalt.err (!%p2138_p1)
}
 0x6d7   : > { %s2142_s10 = scalar_lea.hbm %s2609_s12, 512  ;;  %s2146_s9 = scalar_lea.hbm %s2661_s5, 1024 }
 0x6d8   : > { %p2143_p13 = scmp.ne.s32.totalorder %s2609_s12, %s2142_s10  ;;  %p2147_p4 = scmp.lt.u32.totalorder %s2609_s12, %s2661_s5 }
 0x6d9   : > { %p2148_p5 = scmp.lt.u32.totalorder %s2146_s9, %s2142_s10  ;;  %p2150_p11 = scmp.lt.u32.totalorder %s2142_s10, %s2609_s12 }
 0x6da   : > { %p2144_p6 = pnand %p2143_p13, %p2675_p0 }
 0x6db   : > { %p2149_p8 = por %p2148_p5, %p2147_p4 }
 0x6dc   : > { %p2145_p10 = pneg %p2144_p6 }
 0x6dd   : > { %p2151_p2 = por %p2150_p11, %p2149_p8 }
 0x6df   : > { %p2152_p3 = pnand %p2151_p2, %p2145_p10 }
 0x6e1   : > { %2155 = shalt.err (!%p2152_p3)
}
 0x6e2   : > { %s2211_s7 = smov 128  }
 0x6e3   : > { %1973 = dma.vmem_to_hbm [thread:$0]  (%p2675_p0), %s2611_s17, 512, %s2609_s12, %s1275_s22, %s2211_s7, %s2211_s7, %s2205_s15  }
 0x6e4 PF: > { %s1304_s8 = sand.u32 1, %s2186_s18   ;;  %p2676_p7 = scmp.ne.s32.totalorder %s2666_s25, 0 }
 0x6e5   : > { %p2677_p9 = scmp.ge.s32.totalorder %s2198_s21, 2  ;;  %s1305_s6 = scalar_lea.sflag [#allocation4], %s1304_s8 }
 0x6e7   : > { %p1987_p12 = pnand %p2677_p9, %p2676_p7 }
 0x6e9   : > { %2181 = dma.done.wait (!%p1987_p12), %s1305_s6, 512  }
 0x6ea   : > { %2183 = vsyncadd (!%p1987_p12), %s1305_s6, 4294966784  ;;  %p19_p1 = scmp.ge.s32.totalorder %s2358_s29, 4   ;;  %s2678_s18 = smov %s2190_s19 }
 0x6eb   : > { %s2679_s19 = smov %s2194_s20  ;;  %s2680_s20 = smov %s2374_s27 }
 0x6ec   : > { %s2681_s21 = smov %s2358_s29  ;;  %21 = sbr.rel (!%p19_p1) target bundleno = 6 (0x6), region = 93 }
 0x6f3   :  { %1310 = vsyncpa [#allocation3], 1 }
 0x6f4   :  { %1312 = vsyncpa [#allocation3 + $0x1], 1 }
 0x6f5   :  { %1313 = vsyncpa [#allocation6], 1 }
 0x6f6   :  { %1314 = vsyncpa [#allocation4], 1 }
 0x6f7   :  { %1316 = vsyncpa [#allocation4 + $0x1], 1 }

</bundles_post_ra>
